<compile_context>
chip_gen: v6e
topology: v6e:2x2x1
jax: 0.10.0
libtpu: 0.0.40
codegen_flags: <defaults>
</compile_context>

<pallas_src>
import functools

import jax
import jax.numpy as jnp
from jax import lax
from jax.experimental import pallas as pl
from jax.experimental.pallas import tpu as pltpu

_INV_SQRT2 = 0.7071067811865476


def _rdb_conv3x3_gelu_cat_kernel(x_ref, w_ref, o_ref, col_ref, *,
                                 W, Cin, P, n_spatial_tiles):
    """One (batch, spatial-chunk) grid step of cat((x, gelu(conv3x3(x))), channel).

    x_ref  : (1, Cin_pad, S + 2P)  zero-padded input (channels padded to a multiple of 8,
                                    flat spatial padded with P >= W+1, P % 128 == 0 zero
                                    lanes per side); block index constant along the spatial
                                    tile axis, so it stays resident in VMEM.
    w_ref  : (G, 9*Cin_pad) bf16    im2col weights, column order (kh, kw, cin_pad).
    o_ref  : (1, Cin+G, Sc)         output chunk: [x ; gelu(conv3x3(x, pad=1))].
    col_ref: (9*Cin_pad, Sc) bf16   im2col scratch; per-tap blocks are 8-sublane aligned.
    """
    Cin_pad = x_ref.shape[1]
    Sc = col_ref.shape[1]

    if n_spatial_tiles == 1:
        window = x_ref[0]                                     # (Cin_pad, Sc + 2P), static
        chunk_off = 0
    else:
        # Sc is a multiple of 128 (enforced in the wrapper) -> lane-aligned dynamic load.
        start = pl.multiple_of(pl.program_id(1) * Sc, 128)
        window = x_ref[0, :, pl.ds(start, Sc + 2 * P)]
        chunk_off = pl.program_id(1) * Sc

    # Center tap doubles as the channel passthrough (fuses torch.cat((x, out), dim=1)).
    center = window[:, P:P + Sc]
    o_ref[0, :Cin, :] = center[:Cin]

    # Horizontal-border masks only (vertical borders read the zero halo, no h-masks needed).
    w_ids = (lax.broadcasted_iota(jnp.int32, (1, Sc), 1) + chunk_off) % W
    w_valid = {-1: w_ids >= 1, 0: None, 1: w_ids <= W - 2}

    # im2col: each 3x3 tap is a statically shifted Sc-lane window of the zero-padded slab
    # (lane rotation, XLU slot) -- no concat / zero temporaries -- masked only at the two
    # horizontal image borders, cast to bf16, stored as a full 8-sublane-aligned block.
    for kh in range(3):
        for kw in range(3):
            dh, dw = kh - 1, kw - 1
            off = dh * W + dw
            tap = center if off == 0 else window[:, P + off:P + off + Sc]
            if w_valid[dw] is not None:
                tap = jnp.where(w_valid[dw], tap, 0)
            row = (kh * 3 + kw) * Cin_pad
            col_ref[row:row + Cin_pad, :] = tap.astype(col_ref.dtype)

    # Single fused MXU matmul: (G, 9*Cin_pad) bf16 x (9*Cin_pad, Sc) bf16 -> (G, Sc) f32.
    acc = jnp.dot(w_ref[...], col_ref[...], preferred_element_type=jnp.float32)

    # Exact (erf) GELU — matches torch.nn.GELU's default.
    # TODO(synk): optionally switch to tanh-approx GELU (EUP slot) behind a flag if a bundle
    # dump shows the VALU as the critical slot at production sizes (changes numerics).
    out = 0.5 * acc * (1.0 + lax.erf(acc * jnp.float32(_INV_SQRT2)))
    o_ref[0, Cin:, :] = out.astype(o_ref.dtype)


def rdb_conv_concat(x_nchw, w_eff, *, s_tiles=None, spatial_tile_budget_bytes=12 << 20):
    """cat((x, gelu(conv3x3(x, w_eff, stride=1, pad=1))), channel) for NCHW x.

    x_nchw: (N, Cin, H, W) f32; w_eff: (G, Cin, 3, 3) f32 -> (N, Cin+G, H, W).
    """
    N, Cin, H, W = x_nchw.shape
    G = w_eff.shape[0]
    S = H * W
    Cin_pad = -(-Cin // 8) * 8                 # sublane-aligned channel count
    P = -(-(W + 1) // 128) * 128               # 128-aligned one-row(+1) spatial halo
    itemsize = jnp.dtype(x_nchw.dtype).itemsize

    # Spatial tile count: smallest 128-aligned split of S whose per-tile VMEM footprint
    # fits the budget (sized for v7x's 32 MiB default scoped VMEM; v5e/v6e have more).
    if s_tiles is None:
        s_tiles = 1
        for cand in range(1, max(1, S // 128) + 1):
            if S % cand or (cand > 1 and (S // cand) % 128):
                continue
            sc = S // cand
            tile_bytes = (9 * Cin_pad * sc * 2               # bf16 im2col scratch
                          + Cin_pad * (sc + 2 * P) * 4       # in-kernel window temporaries
                          + 2 * (Cin + G) * sc * itemsize)   # pipelined output block
            s_tiles = cand
            if tile_bytes <= spatial_tile_budget_bytes:
                break
    assert S % s_tiles == 0, (S, s_tiles)
    Sc = S // s_tiles
    assert s_tiles == 1 or Sc % 128 == 0, "spatial chunks must be 128-lane aligned"

    # Lane-dense flat layout + zero halos (cheap wrapper pad; implements padding=1 and
    # sublane-aligns the channel axis so all im2col stores are full vst's).
    x_flat = x_nchw.reshape(N, Cin, S)
    x_pad = jnp.pad(x_flat, ((0, 0), (0, Cin_pad - Cin), (P, P)))

    # (G, Cin, 3, 3) -> (G, 9*Cin_pad) bf16, column order (kh, kw, cin_pad); cast once here.
    w_cols = jnp.pad(jnp.transpose(w_eff, (0, 2, 3, 1)),
                     ((0, 0), (0, 0), (0, 0), (0, Cin_pad - Cin)))
    w_flat = w_cols.reshape(G, 9 * Cin_pad).astype(jnp.bfloat16)

    kernel = functools.partial(_rdb_conv3x3_gelu_cat_kernel,
                               W=W, Cin=Cin, P=P, n_spatial_tiles=s_tiles)

    vmem_need = (2 * Cin_pad * (S + 2 * P) * itemsize    # double-buffered (resident) input
                 + 2 * G * 9 * Cin_pad * 2               # bf16 weights
                 + 2 * (Cin + G) * Sc * itemsize         # double-buffered output chunk
                 + 9 * Cin_pad * Sc * 2                  # bf16 im2col scratch
                 + 4 * Cin_pad * (Sc + 2 * P) * 4)       # window / tap f32 temporaries
    vmem_limit = int(min(48 << 20, max(32 << 20, 2 * vmem_need)))

    # TODO(synk): for very large Cin (late RDB stages) a variant that accumulates 9 per-tap
    # dots (no materialized im2col) would trim VMEM further on v7x; not needed at these sizes.
    out_flat = pl.pallas_call(
        kernel,
        out_shape=jax.ShapeDtypeStruct((N, Cin + G, S), x_nchw.dtype),
        grid_spec=pltpu.PrefetchScalarGridSpec(
            num_scalar_prefetch=0,
            grid=(N, s_tiles),
            in_specs=[
                pl.BlockSpec((1, Cin_pad, S + 2 * P), lambda n, t: (n, 0, 0)),
                pl.BlockSpec((G, 9 * Cin_pad), lambda n, t: (0, 0)),
            ],
            out_specs=pl.BlockSpec((1, Cin + G, Sc), lambda n, t: (n, 0, t)),
            scratch_shapes=[pltpu.VMEM((9 * Cin_pad, Sc), jnp.bfloat16)],
        ),
        compiler_params=pltpu.CompilerParams(
            dimension_semantics=("parallel", "parallel"),
            vmem_limit_bytes=vmem_limit),
    )(x_pad, w_flat)

    return out_flat.reshape(N, Cin + G, H, W)        # free (contiguous) reshape


def make_freeze_conv_params(key, in_ch, out_ch, ksize=3):
    """Deterministic synthetic init mirroring freeze_conv.__init__ (scale=1)."""
    keys = jax.random.split(key, 16)
    weight = jax.random.normal(keys[0], (out_ch, in_ch, ksize, ksize), jnp.float32) * 0.1

    residuals, scores = [], []
    for i in range(3):
        residuals.append(weight)  # Bi_residual = self.weight.clone()
        space_score = jax.random.uniform(keys[1 + i], (ksize, ksize), jnp.float32)
        if out_ch >= 3 and in_ch >= 3:
            ch1 = jax.random.uniform(keys[4 + i], (out_ch, in_ch), jnp.float32)
            ch2 = jax.random.uniform(keys[7 + i], (1, 1), jnp.float32)
            channel_score = jnp.einsum('ab,cd->acbd', ch1, ch2).reshape(out_ch, in_ch)
        else:
            channel_score = jax.random.uniform(keys[10 + i], (out_ch, in_ch), jnp.float32)
        score = channel_score[:, :, None, None] * space_score[None, None, :, :]
        thr = jnp.mean(score) + 0.5 * jnp.std(score, ddof=1)   # torch std is unbiased
        scores.append((score >= thr).astype(jnp.float32))       # BinarizerFn.forward
    return weight, residuals, scores


def _effective_weight(params, flag):
    """Fold flag + binarized scores into one conv weight (conv is linear, bias=None)."""
    weight, residuals, scores = params
    w_eff = jnp.zeros_like(weight)
    for i in range(3):
        w_i = scores[i] * weight + (1.0 - scores[i]) * residuals[i]
        w_eff = w_eff + jnp.float32(flag[i]) * w_i
    return w_eff


def rdb_conv_forward(x, params, flag=(1.0, 0.0, 0.0), s_tiles=None):
    """RDB_Conv.forward: cat((x, GELU(freeze_conv3x3(x, flag))), channel axis)."""
    return rdb_conv_concat(x, _effective_weight(params, flag), s_tiles=s_tiles)


if __name__ == "__main__":
    # RDB_Conv(inChannels=4, growRate=8), input x: (N=2, Cin=4, H=16, W=16) NCHW
    key = jax.random.PRNGKey(0)
    kx, kp = jax.random.split(key)
    x = jax.random.normal(kx, (2, 4, 16, 16), jnp.float32)
    params = make_freeze_conv_params(kp, in_ch=4, out_ch=8, ksize=3)
    flag = (1.0, 0.0, 0.0)

    # Pure-XLA reference of the same forward pass (f32).
    w_eff = _effective_weight(params, flag)
    ref_conv = lax.conv_general_dilated(
        x, w_eff, (1, 1), ((1, 1), (1, 1)),
        dimension_numbers=("NCHW", "OIHW", "NCHW"))
    ref_gelu = 0.5 * ref_conv * (1.0 + lax.erf(ref_conv * jnp.float32(_INV_SQRT2)))
    ref = jnp.concatenate((x, ref_gelu), axis=1)

    # Run both the auto (single-tile) path and an explicit 2-way spatial-tile split.
    for st in (None, 2):
        y = jax.jit(functools.partial(rdb_conv_forward, flag=flag, s_tiles=st))(x, params)
        jax.block_until_ready(y)
        assert y.shape == (2, 4 + 8, 16, 16), y.shape
        err = float(jnp.max(jnp.abs(y - ref)))
        assert err < 5e-2, (st, err)   # bf16 matmul operands, f32 accumulation

    print("KERNEL_OK")
</pallas_src>

<mosaic_0001>
module attributes {stable_mosaic.version = 11 : i64} {
  func.func @_rdb_conv3x3_gelu_cat_kernel(%arg0: i32, %arg1: i32, %arg2: memref<1x8x512xf32, #tpu.memory_space<vmem>>, %arg3: memref<8x72xbf16, #tpu.memory_space<vmem>>, %arg4: memref<1x12x256xf32, #tpu.memory_space<vmem>>, %arg5: memref<72x256xbf16, #tpu.memory_space<vmem>>) attributes {dimension_semantics = [#tpu.dimension_semantics<parallel>, #tpu.dimension_semantics<parallel>], iteration_bounds = array<i64: 2, 1>, scalar_prefetch = 0 : i64, scratch_operands = 1 : i64, tpu.core_type = #tpu.core_type<tc>, window_params = [{transform_indices = @transform_0, window_bounds = array<i64: 1, 8, 512>}, {pipeline_mode = #tpu.pipeline_mode<synchronous>, transform_indices = @transform_1, window_bounds = array<i64: 8, 72>}, {transform_indices = @transform_2, window_bounds = array<i64: 1, 12, 256>}]} {
    %c0 = arith.constant 0 : index
    %c0_0 = arith.constant 0 : index
    %c0_1 = arith.constant 0 : index
    %0 = vector.load %arg2[%c0, %c0_0, %c0_1] : memref<1x8x512xf32, #tpu.memory_space<vmem>>, vector<1x8x512xf32>
    %1 = vector.shape_cast %0 : vector<1x8x512xf32> to vector<8x512xf32>
    %2 = vector.extract_strided_slice %1 {offsets = [0, 128], sizes = [8, 256], strides = [1, 1]} : vector<8x512xf32> to vector<8x256xf32>
    %3 = vector.extract_strided_slice %2 {offsets = [0, 0], sizes = [4, 256], strides = [1, 1]} : vector<8x256xf32> to vector<4x256xf32>
    %c0_2 = arith.constant 0 : index
    %c0_3 = arith.constant 0 : index
    %c0_4 = arith.constant 0 : index
    %4 = vector.load %arg4[%c0_2, %c0_3, %c0_4] : memref<1x12x256xf32, #tpu.memory_space<vmem>>, vector<1x4x256xf32>
    %5 = vector.shape_cast %4 : vector<1x4x256xf32> to vector<4x256xf32>
    %6 = vector.shape_cast %3 : vector<4x256xf32> to vector<1x4x256xf32>
    tpu.vector_store %arg4[%c0_2, %c0_3, %c0_4], %6 {strides = array<i32>} : memref<1x12x256xf32, #tpu.memory_space<vmem>>, vector<1x4x256xf32>,
    %7 = tpu.iota {dimensions = array<i32: 1>} : vector<1x256xi32>
    %c0_i32 = arith.constant 0 : i32
    %8 = vector.broadcast %c0_i32 : i32 to vector<1x256xi32>
    %9 = arith.addi %7, %8 : vector<1x256xi32>
    %c16_i32 = arith.constant 16 : i32
    %c0_i32_5 = arith.constant 0 : i32
    %10 = arith.cmpi eq, %c16_i32, %c0_i32_5 : i32
    %c1_i32 = arith.constant 1 : i32
    %11 = arith.select %10, %c1_i32, %c16_i32 : i32
    %12 = vector.broadcast %11 : i32 to vector<1x256xi32>
    %13 = arith.remsi %9, %12 : vector<1x256xi32>
    %c0_i32_6 = arith.constant 0 : i32
    %14 = vector.broadcast %c0_i32_6 : i32 to vector<1x256xi32>
    %15 = arith.cmpi ne, %13, %14 : vector<1x256xi32>
    %c0_i32_7 = arith.constant 0 : i32
    %16 = vector.broadcast %c0_i32_7 : i32 to vector<1x256xi32>
    %17 = arith.cmpi slt, %13, %16 : vector<1x256xi32>
    %c0_i32_8 = arith.constant 0 : i32
    %18 = arith.cmpi slt, %11, %c0_i32_8 : i32
    %19 = vector.broadcast %18 : i1 to vector<1x256xi1>
    %20 = vector.broadcast %19 : vector<1x256xi1> to vector<1x256xi1>
    %21 = arith.xori %17, %20 : vector<1x256xi1>
    %22 = arith.andi %21, %15 : vector<1x256xi1>
    %23 = vector.broadcast %11 : i32 to vector<1x256xi32>
    %24 = arith.addi %13, %23 : vector<1x256xi32>
    %25 = arith.select %22, %24, %13 : vector<1x256xi1>, vector<1x256xi32>
    %c1_i32_9 = arith.constant 1 : i32
    %26 = vector.broadcast %c1_i32_9 : i32 to vector<1x256xi32>
    %27 = arith.cmpi sge, %25, %26 : vector<1x256xi32>
    %c14_i32 = arith.constant 14 : i32
    %28 = vector.broadcast %c14_i32 : i32 to vector<1x256xi32>
    %29 = arith.cmpi sle, %25, %28 : vector<1x256xi32>
    %30 = vector.extract_strided_slice %1 {offsets = [0, 111], sizes = [8, 256], strides = [1, 1]} : vector<8x512xf32> to vector<8x256xf32>
    %c0_i32_10 = arith.constant 0 : i32
    %31 = arith.sitofp %c0_i32_10 : i32 to f32
    %32 = vector.shape_cast %27 : vector<1x256xi1> to vector<1x256xi1>
    %33 = vector.broadcast %32 : vector<1x256xi1> to vector<8x256xi1>
    %34 = vector.broadcast %31 : f32 to vector<8x256xf32>
    %35 = arith.select %33, %30, %34 : vector<8x256xi1>, vector<8x256xf32>
    %36 = arith.truncf %35 : vector<8x256xf32> to vector<8x256xbf16>
    %c0_11 = arith.constant 0 : index
    %c0_12 = arith.constant 0 : index
    %37 = vector.load %arg5[%c0_11, %c0_12] : memref<72x256xbf16, #tpu.memory_space<vmem>>, vector<8x256xbf16>
    tpu.vector_store %arg5[%c0_11, %c0_12], %36 {strides = array<i32>} : memref<72x256xbf16, #tpu.memory_space<vmem>>, vector<8x256xbf16>,
    %38 = vector.extract_strided_slice %1 {offsets = [0, 112], sizes = [8, 256], strides = [1, 1]} : vector<8x512xf32> to vector<8x256xf32>
    %39 = arith.truncf %38 : vector<8x256xf32> to vector<8x256xbf16>
    %c8 = arith.constant 8 : index
    %c0_13 = arith.constant 0 : index
    %40 = vector.load %arg5[%c8, %c0_13] : memref<72x256xbf16, #tpu.memory_space<vmem>>, vector<8x256xbf16>
    tpu.vector_store %arg5[%c8, %c0_13], %39 {strides = array<i32>} : memref<72x256xbf16, #tpu.memory_space<vmem>>, vector<8x256xbf16>,
    %41 = vector.extract_strided_slice %1 {offsets = [0, 113], sizes = [8, 256], strides = [1, 1]} : vector<8x512xf32> to vector<8x256xf32>
    %c0_i32_14 = arith.constant 0 : i32
    %42 = arith.sitofp %c0_i32_14 : i32 to f32
    %43 = vector.shape_cast %29 : vector<1x256xi1> to vector<1x256xi1>
    %44 = vector.broadcast %43 : vector<1x256xi1> to vector<8x256xi1>
    %45 = vector.broadcast %42 : f32 to vector<8x256xf32>
    %46 = arith.select %44, %41, %45 : vector<8x256xi1>, vector<8x256xf32>
    %47 = arith.truncf %46 : vector<8x256xf32> to vector<8x256xbf16>
    %c16 = arith.constant 16 : index
    %c0_15 = arith.constant 0 : index
    %48 = vector.load %arg5[%c16, %c0_15] : memref<72x256xbf16, #tpu.memory_space<vmem>>, vector<8x256xbf16>
    tpu.vector_store %arg5[%c16, %c0_15], %47 {strides = array<i32>} : memref<72x256xbf16, #tpu.memory_space<vmem>>, vector<8x256xbf16>,
    %49 = vector.extract_strided_slice %1 {offsets = [0, 127], sizes = [8, 256], strides = [1, 1]} : vector<8x512xf32> to vector<8x256xf32>
    %c0_i32_16 = arith.constant 0 : i32
    %50 = arith.sitofp %c0_i32_16 : i32 to f32
    %51 = vector.shape_cast %27 : vector<1x256xi1> to vector<1x256xi1>
    %52 = vector.broadcast %51 : vector<1x256xi1> to vector<8x256xi1>
    %53 = vector.broadcast %50 : f32 to vector<8x256xf32>
    %54 = arith.select %52, %49, %53 : vector<8x256xi1>, vector<8x256xf32>
    %55 = arith.truncf %54 : vector<8x256xf32> to vector<8x256xbf16>
    %c24 = arith.constant 24 : index
    %c0_17 = arith.constant 0 : index
    %56 = vector.load %arg5[%c24, %c0_17] : memref<72x256xbf16, #tpu.memory_space<vmem>>, vector<8x256xbf16>
    tpu.vector_store %arg5[%c24, %c0_17], %55 {strides = array<i32>} : memref<72x256xbf16, #tpu.memory_space<vmem>>, vector<8x256xbf16>,
    %57 = arith.truncf %2 : vector<8x256xf32> to vector<8x256xbf16>
    %c32 = arith.constant 32 : index
    %c0_18 = arith.constant 0 : index
    %58 = vector.load %arg5[%c32, %c0_18] : memref<72x256xbf16, #tpu.memory_space<vmem>>, vector<8x256xbf16>
    tpu.vector_store %arg5[%c32, %c0_18], %57 {strides = array<i32>} : memref<72x256xbf16, #tpu.memory_space<vmem>>, vector<8x256xbf16>,
    %59 = vector.extract_strided_slice %1 {offsets = [0, 129], sizes = [8, 256], strides = [1, 1]} : vector<8x512xf32> to vector<8x256xf32>
    %c0_i32_19 = arith.constant 0 : i32
    %60 = arith.sitofp %c0_i32_19 : i32 to f32
    %61 = vector.shape_cast %29 : vector<1x256xi1> to vector<1x256xi1>
    %62 = vector.broadcast %61 : vector<1x256xi1> to vector<8x256xi1>
    %63 = vector.broadcast %60 : f32 to vector<8x256xf32>
    %64 = arith.select %62, %59, %63 : vector<8x256xi1>, vector<8x256xf32>
    %65 = arith.truncf %64 : vector<8x256xf32> to vector<8x256xbf16>
    %c40 = arith.constant 40 : index
    %c0_20 = arith.constant 0 : index
    %66 = vector.load %arg5[%c40, %c0_20] : memref<72x256xbf16, #tpu.memory_space<vmem>>, vector<8x256xbf16>
    tpu.vector_store %arg5[%c40, %c0_20], %65 {strides = array<i32>} : memref<72x256xbf16, #tpu.memory_space<vmem>>, vector<8x256xbf16>,
    %67 = vector.extract_strided_slice %1 {offsets = [0, 143], sizes = [8, 256], strides = [1, 1]} : vector<8x512xf32> to vector<8x256xf32>
    %c0_i32_21 = arith.constant 0 : i32
    %68 = arith.sitofp %c0_i32_21 : i32 to f32
    %69 = vector.shape_cast %27 : vector<1x256xi1> to vector<1x256xi1>
    %70 = vector.broadcast %69 : vector<1x256xi1> to vector<8x256xi1>
    %71 = vector.broadcast %68 : f32 to vector<8x256xf32>
    %72 = arith.select %70, %67, %71 : vector<8x256xi1>, vector<8x256xf32>
    %73 = arith.truncf %72 : vector<8x256xf32> to vector<8x256xbf16>
    %c48 = arith.constant 48 : index
    %c0_22 = arith.constant 0 : index
    %74 = vector.load %arg5[%c48, %c0_22] : memref<72x256xbf16, #tpu.memory_space<vmem>>, vector<8x256xbf16>
    tpu.vector_store %arg5[%c48, %c0_22], %73 {strides = array<i32>} : memref<72x256xbf16, #tpu.memory_space<vmem>>, vector<8x256xbf16>,
    %75 = vector.extract_strided_slice %1 {offsets = [0, 144], sizes = [8, 256], strides = [1, 1]} : vector<8x512xf32> to vector<8x256xf32>
    %76 = arith.truncf %75 : vector<8x256xf32> to vector<8x256xbf16>
    %c56 = arith.constant 56 : index
    %c0_23 = arith.constant 0 : index
    %77 = vector.load %arg5[%c56, %c0_23] : memref<72x256xbf16, #tpu.memory_space<vmem>>, vector<8x256xbf16>
    tpu.vector_store %arg5[%c56, %c0_23], %76 {strides = array<i32>} : memref<72x256xbf16, #tpu.memory_space<vmem>>, vector<8x256xbf16>,
    %78 = vector.extract_strided_slice %1 {offsets = [0, 145], sizes = [8, 256], strides = [1, 1]} : vector<8x512xf32> to vector<8x256xf32>
    %c0_i32_24 = arith.constant 0 : i32
    %79 = arith.sitofp %c0_i32_24 : i32 to f32
    %80 = vector.shape_cast %29 : vector<1x256xi1> to vector<1x256xi1>
    %81 = vector.broadcast %80 : vector<1x256xi1> to vector<8x256xi1>
    %82 = vector.broadcast %79 : f32 to vector<8x256xf32>
    %83 = arith.select %81, %78, %82 : vector<8x256xi1>, vector<8x256xf32>
    %84 = arith.truncf %83 : vector<8x256xf32> to vector<8x256xbf16>
    %c64 = arith.constant 64 : index
    %c0_25 = arith.constant 0 : index
    %85 = vector.load %arg5[%c64, %c0_25] : memref<72x256xbf16, #tpu.memory_space<vmem>>, vector<8x256xbf16>
    tpu.vector_store %arg5[%c64, %c0_25], %84 {strides = array<i32>} : memref<72x256xbf16, #tpu.memory_space<vmem>>, vector<8x256xbf16>,
    %c0_26 = arith.constant 0 : index
    %c0_27 = arith.constant 0 : index
    %86 = vector.load %arg3[%c0_26, %c0_27] : memref<8x72xbf16, #tpu.memory_space<vmem>>, vector<8x72xbf16>
    %c0_28 = arith.constant 0 : index
    %c0_29 = arith.constant 0 : index
    %87 = vector.load %arg5[%c0_28, %c0_29] : memref<72x256xbf16, #tpu.memory_space<vmem>>, vector<72x256xbf16>
    %cst = arith.constant dense<0.000000e+00> : vector<8x256xf32>
    %88 = tpu.matmul %86, %87, %cst {dimension_numbers = #tpu.dot_dimension_numbers<[1], [0], [0], [1], [0, 0, 1, 1], [], []>} : vector<8x72xbf16>, vector<72x256xbf16>, vector<8x256xf32> -> vector<8x256xf32>
    %cst_30 = arith.constant 5.000000e-01 : f32
    %89 = vector.broadcast %cst_30 : f32 to vector<8x256xf32>
    %90 = arith.mulf %89, %88 : vector<8x256xf32>
    %cst_31 = arith.constant 0.707106769 : f32
    %91 = vector.broadcast %cst_31 : f32 to vector<8x256xf32>
    %92 = arith.mulf %88, %91 : vector<8x256xf32>
    %93 = math.erf %92 : vector<8x256xf32>
    %cst_32 = arith.constant 1.000000e+00 : f32
    %94 = vector.broadcast %cst_32 : f32 to vector<8x256xf32>
    %95 = arith.addf %94, %93 : vector<8x256xf32>
    %96 = arith.mulf %90, %95 : vector<8x256xf32>
    %c0_33 = arith.constant 0 : index
    %c4 = arith.constant 4 : index
    %c0_34 = arith.constant 0 : index
    %97 = vector.load %arg4[%c0_33, %c4, %c0_34] : memref<1x12x256xf32, #tpu.memory_space<vmem>>, vector<1x8x256xf32>
    %98 = vector.shape_cast %97 : vector<1x8x256xf32> to vector<8x256xf32>
    %99 = vector.shape_cast %96 : vector<8x256xf32> to vector<1x8x256xf32>
    tpu.vector_store %arg4[%c0_33, %c4, %c0_34], %99 {strides = array<i32>} : memref<1x12x256xf32, #tpu.memory_space<vmem>>, vector<1x8x256xf32>,
    return
  }
  func.func @transform_0(%arg0: i32, %arg1: i32) -> (i32, i32, i32) {
    %c0_i32 = arith.constant 0 : i32
    %c0_i32_0 = arith.constant 0 : i32
    %c0_i32_1 = arith.constant 0 : i32
    return %arg0, %c0_i32, %c0_i32_0 : i32, i32, i32
  }
  func.func @transform_1(%arg0: i32, %arg1: i32) -> (i32, i32) {
    %c0_i32 = arith.constant 0 : i32
    %c0_i32_0 = arith.constant 0 : i32
    %c0_i32_1 = arith.constant 0 : i32
    return %c0_i32, %c0_i32_0 : i32, i32
  }
  func.func @transform_2(%arg0: i32, %arg1: i32) -> (i32, i32, i32) {
    %c0_i32 = arith.constant 0 : i32
    %c0_i32_0 = arith.constant 0 : i32
    return %arg0, %c0_i32, %arg1 : i32, i32, i32
  }
}

</mosaic_0001>

<bundles_post_ra>
// kernel: rdb_conv_forward.1
= control target key start
LH: loop header
LB: loop body
LE: loop exit
PB: predicated region body
PF: predicated region fallthrough
CT: control target
= control target key end

     0   :  { %s778_s9 = smov 0   ;;  %s780_s10 = smov 0   ;;  %s894_s0 = inlined_call_operand.vmem [shape: f32[2,8,512], index: 0, kind: input, shape index: {}]   ;;  %s895_s1 = inlined_call_operand.vmem [shape: bf16[8,72], index: 1, kind: input, shape index: {}]   ;;  %s896_s2 = inlined_call_operand.vmem [shape: f32[2,12,256], index: 2, kind: output, shape index: {}]  }
   0x1   :  { %s782_s11 = smov 0  }
   0x2 LB: > { %s24_s12 = sadd.s32 1, %s747_s10  ;;  %p602_p0 = scmp.ge.s32.totalorder %s751_s11, 1  ;;  %s751_s11 = sphi %s782_s11, %s12_s11   ;;  %s747_s10 = sphi %s780_s10, %s906_s10   ;;  %s743_s9 = sphi %s778_s9, %s905_s9  }
   0x3   : > { %p26_p1 = scmp.ge.s32.totalorder %s24_s12, 2  ;;  %p126_p2 = scmp.lt.s32.totalorder %s751_s11, 3 }
   0x5   : > { %s908_s12 = smov (%p26_p1, %s24_s12), 0  ;;  %p127_p3 = pnand %p602_p0, %p126_p2 }
   0x6   : > { %p152_p4 = scmp.lt.s32.totalorder (!%p127_p3), %s743_s9, 1  ;;  %s753_s17 = smov (!%p127_p3), 113  }
   0x7   : > { %130 = sbr.rel (%p127_p3) target bundleno = 389 (0x185), region = 28  ;;  %s754_s18 = smov (!%p127_p3), 111  }
   0x8   : > { %s755_s19 = smov (!%p127_p3), 112   ;;  %s756_s20 = smov (!%p127_p3), 127  }
   0x9   : > { %s757_s21 = smov (!%p127_p3), 1   ;;  %s758_s22 = smov (!%p127_p3), 15  }
   0xa   : > { %s759_s23 = smov (!%p127_p3), 17   ;;  %s761_s24 = smov (!%p127_p3), 16  }
   0xc   : > { %s910_s9 = smov (!%p152_p4, %s743_s9), 1  ;;  %v760_v11 = vmov 0   ;;  %v174_v12 = vlaneseq  ;;  %vm374_vm0 = vcmask 908288   ;;  %vm337_vm3 = vcmask 924672  }
   0xd   : > { %s631_s13 = sshll.u32 %s910_s9, 5  ;;  %488 = vmatprep.mubr.bf16.mxu0 %v760_v11  ;;  %vm251_vm5 = vcmask 1043456   ;;  %vm364_vm7 = vcmask 916480   ;;  %vm315_vm8 = vcmask 1039360   ;;  %vm762_vm9 = vmmov 1  }
   0xe   : > { %s156_s16 = scalar_lea.vmem %s894_s0, %s631_s13  ;;  %s824_s27 = scalar_lea.vmem %s896_s2, %s631_s13  ;;  %v175_v13 = vand.u32 127, %v174_v12  ;;  %vm289_vm11 = vcmask 7168   ;;  %vm267_vm12 = vcmask 121856   ;;  %vm218_vm15 = vcmask 138240  }
   0xf   : > { %v804_v0 = vld [vmem:[%s156_s16 + $0x8] sm:$0xff]  ;;  %v806_v1 = vld [vmem:[%s156_s16 + $0x10] sm:$0xff]  ;;  %v171_v3 = vld [vmem:[%s156_s16 + $0x18] sm:$0xff] }
  0x10   : > { %v700_v2 = vpack.i.bf16 %v806_v1, %v804_v0  ;;  %v641_v4 = vpack.c.bf16 %v171_v3, %v171_v3  ;;  %v638_v5 = vpack.c.bf16 %v806_v1, %v804_v0  ;;  %v705_v6 = vpack.i.bf16 %v171_v3, %v806_v1  ;;  %v168_v7 = vld [vmem:[%s156_s16] sm:$0xff]  ;;  %172 = vst [vmem:[%s824_s27] sm:$0xf] %v804_v0 }
  0x11   : > { %v720_v8 = vpack.i.bf16 %v804_v0, %v168_v7  ;;  %v635_v9 = vpack.c.bf16 %v806_v1, %v806_v1  ;;  %v634_v10 = vpack.c.bf16 %v804_v0, %v168_v7  ;;  %173 = vst [vmem:[%s824_s27 + $0x8] sm:$0xf] %v806_v1  ;;  %v176_v14 = vadd.s32 128, %v175_v13 }
  0x12   : > { %701 = vrot.lane.b32.xlu1 %v700_v2, %s753_s17  ;;  %696 = vrot.lane.b32.xlu0 %v700_v2, %s754_s18  ;;  %v181_v15 = vand.u32 15, %v175_v13 }
  0x13   : > { %v188_v16 = vand.u32 15, %v176_v14 }
  0x14   : > { %vm830_vm1 = vcmp.le.s32.totalorder %v181_v15, 14  ;;  %vm846_vm6 = vcmp.ge.s32.totalorder %v181_v15, 1 }
  0x15   : > { %vm834_vm2 = vcmp.le.s32.totalorder %v188_v16, 14  ;;  %vm840_vm4 = vcmp.ge.s32.totalorder %v188_v16, 1  ;;  %vm652_vm13 = vmpackc.low %vm830_vm1, %vm762_vm9 }
  0x16   : > { %335 = vrot.lane.b32.xlu1 %v171_v3, %s753_s17  ;;  %372 = vrot.lane.b32.xlu0 %v171_v3, %s754_s18  ;;  %vm649_vm10 = vmpackc.low %vm834_vm2, %vm762_vm9 }
  0x17   : > { %vm655_vm14 = vmpackc.low %vm840_vm4, %vm834_vm2 }
  0x1a   : > { %359 = vrot.lane.b32.xlu1 %v641_v4, %s755_s19  ;;  %357 = vrot.lane.b32.xlu0 %v638_v5, %s755_s19 }
  0x1e   : > { %309 = vrot.lane.b32.xlu1 %v804_v0, %s756_s20  ;;  %706 = vrot.lane.b32.xlu0 %v705_v6, %s756_s20 }
  0x22   : > { %716 = vrot.lane.b32.xlu1 %v700_v2, %s757_s21  ;;  %711 = vrot.lane.b32.xlu0 %v700_v2, %s758_s22 }
  0x26   : > { %216 = vrot.lane.b32.xlu1 %v806_v1, %s759_s23  ;;  %721 = vrot.lane.b32.xlu0 %v720_v8, %s759_s23 }
  0x2a   : > { %247 = vrot.lane.b32.xlu1 %v635_v9, %s761_s24  ;;  %245 = vrot.lane.b32.xlu0 %v634_v10, %s761_s24 }
  0x2e   : > { %283 = vrot.lane.b32.xlu1 %v168_v7, %s757_s21  ;;  %261 = vrot.lane.b32.xlu0 %v168_v7, %s758_s22 }
  0x84   : > { %v702_v17 = vpop.permute.xlu1 %701  ;;  %v697_v18 = vpop.permute.xlu0 %696 }
  0x85   : > { %v699_v19 = vunpack.i.h.bf16 %v697_v18  ;;  %v698_v20 = vunpack.i.l.bf16 %v697_v18  ;;  %v704_v22 = vunpack.i.h.bf16 %v702_v17  ;;  %v703_v23 = vunpack.i.l.bf16 %v702_v17 }
  0x87   : > { %v375_v25 = vsel %vm374_vm0, %v698_v20, %v699_v19  ;;  %v338_v35 = vsel %vm337_vm3, %v703_v23, %v704_v22 }
  0x88   : > { %v336_v26 = vpop.permute.xlu1 %335  ;;  %v373_v27 = vpop.permute.xlu0 %372  ;;  %v379_v28 = vsel %vm830_vm1, %v375_v25, 0.0  ;;  %v342_v43 = vsel %vm846_vm6, %v338_v35, 0.0  ;;  %v390_v25 = vld [vmem:[%s895_s1] sm:$0xf] }
  0x89   : > { %v339_v30 = vsel %vm337_vm3, %v704_v22, %v336_v26  ;;  %v376_v31 = vsel %vm374_vm0, %v699_v19, %v373_v27  ;;  %v647_v32 = vpack.c.bf16 %v379_v28, %v379_v28  ;;  %vm253_vm0 = vcmask 130048  }
  0x8a   : > { %v380_v33 = vsel %vm834_vm2, %v376_v31, 0.0  ;;  %v343_v37 = vsel %vm840_vm4, %v339_v30, 0.0  ;;  %vm658_vm2 = vmpackc.low %vm846_vm6, %vm830_vm1  ;;  %vm445_vm3 = vcmask 588800  }
  0x8b   : > { %v648_v36 = vpack.c.bf16 %v380_v33, %v380_v33  ;;  %v451_v42 = vsel %vm251_vm5, %v647_v32, 0  ;;  %v640_v44 = vpack.c.bf16 %v343_v37, %v342_v43 }
  0x8c   : > { %v360_v38 = vpop.permute.xlu1 %359  ;;  %v358_v39 = vpop.permute.xlu0 %357 }
  0x8d   : > { %v362_v40 = vrot.slane %v360_v38, 4  ;;  %v361_v41 = vrot.slane %v358_v39, 4  ;;  %627 = vmatprep.subr.msk.bf16.mxu0 %vm251_vm5, %v648_v36 }
  0x8e   : > { %463 = vmatpush1.bf16.msra.mxu0 %v451_v42 }
  0x8f   : > { %v363_v45 = vsel %vm251_vm5, %v361_v41, %v362_v40 }
  0x90   : > { %v365_v46 = vsel %vm364_vm7, %v358_v39, %v363_v45  ;;  %v310_v47 = vpop.permute.xlu1 %309  ;;  %v707_v48 = vpop.permute.xlu0 %706 }
  0x91   : > { %v623_v49 = vcombine.low %v640_v44, %v365_v46  ;;  %v624_v50 = vcombine.high %v640_v44, %v365_v46  ;;  %v709_v51 = vunpack.i.h.bf16 %v707_v48  ;;  %v708_v52 = vunpack.i.l.bf16 %v707_v48 }
  0x93   : > { %v316_v53 = vsel %vm315_vm8, %v310_v47, %v708_v52  ;;  %v317_v54 = vsel %vm315_vm8, %v708_v52, %v709_v51  ;;  %464 = vmatprep.subr.bf16.mxu0 %v624_v50 }
  0x94   : > { %v650_v55 = vpack.c.bf16 %v317_v54, %v806_v1  ;;  %v717_v56 = vpop.permute.xlu1 %716  ;;  %465 = vmatpush1.bf16.msra.mxu0 %v623_v49  ;;  %v712_v57 = vpop.permute.xlu0 %711  ;;  %v653_v62 = vpack.c.bf16 %v316_v53, %v804_v0 }
  0x95   : > { %v719_v58 = vunpack.i.h.bf16 %v717_v56  ;;  %v718_v59 = vunpack.i.l.bf16 %v717_v56  ;;  %v714_v60 = vunpack.i.h.bf16 %v712_v57  ;;  %v713_v61 = vunpack.i.l.bf16 %v712_v57 }
  0x96   : > { %651 = vmatprep.subr.msk.bf16.mxu0 %vm649_vm10, %v650_v55 }
  0x97   : > { %v291_v63 = vsel %vm289_vm11, %v718_v59, %v719_v58  ;;  %v269_v2 = vsel %vm267_vm12, %v713_v61, %v714_v60 }
  0x98   : > { %v656_v1 = vpack.c.bf16 %v291_v63, %v269_v2  ;;  %v217_v3 = vpop.permute.xlu1 %216  ;;  %654 = vmatpush1.bf16.msk.msra.mxu0 %vm652_vm13, %v653_v62  ;;  %v722_v4 = vpop.permute.xlu0 %721 }
  0x99   : > { %v724_v5 = vunpack.i.h.bf16 %v722_v4  ;;  %v723_v6 = vunpack.i.l.bf16 %v722_v4 }
  0x9a   : > { %657 = vmatprep.subr.msk.bf16.mxu0 %vm655_vm14, %v656_v1 }
  0x9b   : > { %v220_v7 = vsel %vm218_vm15, %v724_v5, %v217_v3  ;;  %v219_v0 = vsel %vm218_vm15, %v723_v6, %v724_v5 }
  0x9c   : > { %v248_v8 = vpop.permute.xlu1 %247  ;;  %v246_v9 = vpop.permute.xlu0 %245  ;;  %v223_v12 = vsel %vm846_vm6, %v219_v0, 0.0  ;;  %v224_v13 = vsel %vm840_vm4, %v220_v7, 0.0 }
  0x9d   : > { %v250_v10 = vrot.slane %v248_v8, 4  ;;  %v249_v11 = vrot.slane %v246_v9, 4  ;;  %v633_v18 = vpack.c.bf16 %v224_v13, %v223_v12 }
  0x9f   : > { %v252_v14 = vsel %vm251_vm5, %v249_v11, %v250_v10 }
  0xa0   : > { %v254_v15 = vsel %vm253_vm0, %v246_v9, %v252_v14  ;;  %v284_v16 = vpop.permute.xlu1 %283  ;;  %v262_v17 = vpop.permute.xlu0 %261 }
  0xa1   : > { %v290_v19 = vsel %vm289_vm11, %v284_v16, %v718_v59  ;;  %v268_v20 = vsel %vm267_vm12, %v262_v17, %v713_v61  ;;  %v618_v23 = vcombine.high %v633_v18, %v254_v15  ;;  %v617_v24 = vcombine.low %v633_v18, %v254_v15 }
  0xa2   : > { %v659_v22 = vpack.c.bf16 %v290_v19, %v268_v20 }
  0xa4   : > { %660 = vmatpush1.bf16.msk.msra.mxu0 %vm658_vm2, %v659_v22 }
  0xa5   : > { %470 = vmatprep.subr.bf16.mxu0 %v618_v23 }
  0xa8   : > { %471 = vmatpush1.bf16.msra.mxu0 %v617_v24 }
  0xab   : > { %628 = vmatmul.mubr.msk.bf16.vlgmr.msra.gmra.mxu0 %vm445_vm3, %v390_v25 }
 0x16b   : > { %v490_v26 = vpop.f32.mrf.mxu0 }
 0x16c   : > { %v499_v27 = vmul.f32 0.70710677, %v490_v26  ;;  %v497_v32 = vmul.f32 0.5, %v490_v26 }
 0x16d   : > { %v492_v28 = vpop.f32.mrf.mxu0 }
 0x16e   : > { %725 = verf.f32 %v499_v27  ;;  %v500_v21 = vmul.f32 0.70710677, %v492_v28  ;;  %v498_v36 = vmul.f32 0.5, %v492_v28 }
 0x16f   : > { %v494_v29 = vpop.f32.mrf.mxu0 }
 0x170   : > { %727 = verf.f32 %v500_v21 }
 0x171   : > { %v495_v30 = vpop.f32.mrf.mxu0 }
 0x17b   : > { %v726_v31 = vpop.eup %725 }
 0x17c   : > { %v503_v33 = vadd.f32 1.0, %v726_v31 }
 0x17d   : > { %v728_v34 = vpop.eup %727 }
 0x17e   : > { %v505_v35 = vmul.f32 %v503_v33, %v497_v32  ;;  %v504_v37 = vadd.f32 1.0, %v728_v34 }
 0x180   : > { %v509_v38 = vrot.slane %v505_v35, 4  ;;  %v506_v39 = vmul.f32 %v504_v37, %v498_v36 }
 0x182   : > { %513 = vst [vmem:[%s824_s27 + $0x10] ss:$-12 sps:$4 sm:$0xff] %v509_v38   ;;  %v510_v40 = vrot.slane %v506_v39, 4 }
 0x184   : > { %514 = vst [vmem:[%s824_s27 + $0x18] ss:$-12 sps:$4 sm:$0xff] %v510_v40  }
 0x185 PF: > { %s12_s11 = sadd.s32 1, %s751_s11   ;;  %s905_s9 = smov %s747_s10 }
 0x186   : > { %p9_p5 = scmp.ge.s32.totalorder %s12_s11, 4   ;;  %s906_s10 = smov %s908_s12 }
 0x188   :  { %11 = sbr.rel (!%p9_p5) target bundleno = 2 (0x2), region = 58 }

</bundles_post_ra>
